<compile_context>
chip_gen: v7x
topology: tpu7x:2x2x1
jax: 0.10.0
libtpu: 0.0.40
codegen_flags: <defaults>
</compile_context>

<pallas_src>
import functools

import jax
import jax.numpy as jnp
from jax.experimental import pallas as pl
from jax.experimental.pallas import tpu as pltpu


# ---------------------------------------------------------------------------
# Kernel
# ---------------------------------------------------------------------------
def _vae_forward_kernel(
    x_ref,        # (TB, nin_p)    bf16
    eps_ref,      # (TB, nz_p)     f32
    w1_ref,       # (nin_p, nh_p)  bf16   encoder hidden
    b1_ref,       # (1, nh_p)      f32
    whead_ref,    # (nh_p, 2*nz_p) bf16   packed [mu | logvar] head
    bhead_ref,    # (1, 2*nz_p)    f32
    wd1_ref,      # (nz_p, nh_p)   bf16   decoder hidden
    bd1_ref,      # (1, nh_p)      f32
    wd2_ref,      # (nh_p, nin_p)  bf16   reconstruction head
    bd2_ref,      # (1, nin_p)     f32
    recon_ref,    # (TB, nin_p)    f32 out
    stats_ref,    # (TB, 2*nz_p)   f32 out  (packed [mu | logvar])
):
    nz_p = eps_ref.shape[-1]

    x = x_ref[...]  # bf16

    # ---- encoder hidden (MXU bf16, f32 accumulate; tanh in f32) ----
    h = jnp.tanh(
        jnp.dot(x, w1_ref[...], preferred_element_type=jnp.float32) + b1_ref[...]
    )

    # ---- fused mu/logvar head: one lane-dense matmul ----
    stats = (
        jnp.dot(h.astype(jnp.bfloat16), whead_ref[...],
                preferred_element_type=jnp.float32)
        + bhead_ref[...]
    )
    mu = stats[:, :nz_p]
    logvar = stats[:, nz_p:]

    # ---- reparameterization (f32 elementwise; exp on EUP) ----
    z = mu + jnp.exp(0.5 * logvar) * eps_ref[...]

    # ---- decoder ----
    hd = jnp.tanh(
        jnp.dot(z.astype(jnp.bfloat16), wd1_ref[...],
                preferred_element_type=jnp.float32)
        + bd1_ref[...]
    )
    recon = (
        jnp.dot(hd.astype(jnp.bfloat16), wd2_ref[...],
                preferred_element_type=jnp.float32)
        + bd2_ref[...]
    )

    recon_ref[...] = recon
    stats_ref[...] = stats


# ---------------------------------------------------------------------------
# Wrapper
# ---------------------------------------------------------------------------
def _round_up(x: int, m: int) -> int:
    return ((x + m - 1) // m) * m


def _pad2(a, rows: int, cols: int):
    return jnp.pad(a, ((0, rows - a.shape[0]), (0, cols - a.shape[1])))


def _choose_batch_tile(B: int, nin_p: int, nz_p: int,
                       tile_budget_bytes: int = 8 * 1024 * 1024) -> int:
    """Pick a batch tile that keeps double-buffered activation tiles small
    (sized conservatively so the same tile also fits v7x's 64 MiB VMEM)."""
    # Double-buffered per-row bytes: x(bf16) + eps(f32) + recon(f32) + stats(f32)
    per_row = 2 * (nin_p * 2 + nz_p * 4 + nin_p * 4 + 2 * nz_p * 4)
    tb = tile_budget_bytes // per_row
    tb = max(8, min(tb, 512))
    tb = (tb // 8) * 8                       # sublane multiple
    tb = min(tb, _round_up(B, 8))            # don't over-pad tiny batches
    return tb


@functools.partial(jax.jit, static_argnames=("tb",))
def vae_forward(x, eps, params, *, tb=None):
    """Fused VAE forward pass.

    x:   (B, nin) f32
    eps: (B, nz)  f32
    Returns (recon_logits (B, nin), mu (B, nz), logvar (B, nz)), all f32.
    """
    B, nin = x.shape
    nz = eps.shape[1]
    nh = params["w1"].shape[1]

    nin_p = _round_up(nin, 128)
    nz_p = _round_up(nz, 128)
    nh_p = _round_up(nh, 128)

    if tb is None:
        tb = _choose_batch_tile(B, nin_p, nz_p)
    B_p = _round_up(B, tb)

    # ---- pack + pad weights (bf16 operands, f32 biases); zero padding keeps
    #      the padded lanes numerically inert (exp(0)=1 multiplied by eps=0).
    w1p = _pad2(params["w1"], nin_p, nh_p).astype(jnp.bfloat16)
    b1p = _pad2(params["b1"], 1, nh_p).astype(jnp.float32)
    wheadp = jnp.concatenate(
        [_pad2(params["wmu"], nh_p, nz_p), _pad2(params["wlv"], nh_p, nz_p)],
        axis=1,
    ).astype(jnp.bfloat16)
    bheadp = jnp.concatenate(
        [_pad2(params["bmu"], 1, nz_p), _pad2(params["blv"], 1, nz_p)], axis=1
    ).astype(jnp.float32)
    wd1p = _pad2(params["wd1"], nz_p, nh_p).astype(jnp.bfloat16)
    bd1p = _pad2(params["bd1"], 1, nh_p).astype(jnp.float32)
    wd2p = _pad2(params["wd2"], nh_p, nin_p).astype(jnp.bfloat16)
    bd2p = _pad2(params["bd2"], 1, nin_p).astype(jnp.float32)

    xp = _pad2(x, B_p, nin_p).astype(jnp.bfloat16)
    epsp = _pad2(eps, B_p, nz_p).astype(jnp.float32)

    grid = (B_p // tb,)

    def resident(shape):
        # Constant block index -> weight/bias stays VMEM-resident across steps.
        return pl.BlockSpec(shape, lambda i: (0, 0))

    in_specs = [
        pl.BlockSpec((tb, nin_p), lambda i: (i, 0)),      # x tile
        pl.BlockSpec((tb, nz_p), lambda i: (i, 0)),       # eps tile
        resident((nin_p, nh_p)), resident((1, nh_p)),     # w1, b1
        resident((nh_p, 2 * nz_p)), resident((1, 2 * nz_p)),  # packed head
        resident((nz_p, nh_p)), resident((1, nh_p)),      # wd1, bd1
        resident((nh_p, nin_p)), resident((1, nin_p)),    # wd2, bd2
    ]
    out_specs = (
        pl.BlockSpec((tb, nin_p), lambda i: (i, 0)),      # recon logits
        pl.BlockSpec((tb, 2 * nz_p), lambda i: (i, 0)),   # packed [mu | logvar]
    )
    out_shape = (
        jax.ShapeDtypeStruct((B_p, nin_p), jnp.float32),
        jax.ShapeDtypeStruct((B_p, 2 * nz_p), jnp.float32),
    )

    recon_p, stats_p = pl.pallas_call(
        _vae_forward_kernel,
        grid=grid,
        in_specs=in_specs,
        out_specs=out_specs,
        out_shape=out_shape,
        compiler_params=pltpu.CompilerParams(
            dimension_semantics=("parallel",),            # megacore on v7x
            vmem_limit_bytes=32 * 1024 * 1024,            # explicit, v7x-safe
        ),
    )(xp, epsp, w1p, b1p, wheadp, bheadp, wd1p, bd1p, wd2p, bd2p)

    recon = recon_p[:B, :nin]
    mu = stats_p[:B, :nz]
    logvar = stats_p[:B, nz_p:nz_p + nz]
    return recon, mu, logvar


def init_params(key, nin, nz, nh):
    """Deterministic synthetic parameters (shapes implied by (nin, nz, nh))."""
    ks = jax.random.split(key, 6)
    scale = 0.1
    return {
        "w1":  scale * jax.random.normal(ks[0], (nin, nh), jnp.float32),
        "b1":  jnp.zeros((1, nh), jnp.float32),
        "wmu": scale * jax.random.normal(ks[1], (nh, nz), jnp.float32),
        "bmu": jnp.zeros((1, nz), jnp.float32),
        "wlv": scale * jax.random.normal(ks[2], (nh, nz), jnp.float32),
        "blv": jnp.zeros((1, nz), jnp.float32),
        "wd1": scale * jax.random.normal(ks[3], (nz, nh), jnp.float32),
        "bd1": jnp.zeros((1, nh), jnp.float32),
        "wd2": scale * jax.random.normal(ks[4], (nh, nin), jnp.float32),
        "bd2": jnp.zeros((1, nin), jnp.float32),
    }


if __name__ == "__main__":
    # Small shapes consistent with BaseVAE(nin, nz, nh).
    B, nin, nz, nh = 8, 32, 8, 32

    key = jax.random.PRNGKey(0)
    k_x, k_eps, k_p = jax.random.split(key, 3)

    x = jax.random.normal(k_x, (B, nin), jnp.float32)
    eps = jax.random.normal(k_eps, (B, nz), jnp.float32)
    params = init_params(k_p, nin, nz, nh)

    recon, mu, logvar = vae_forward(x, eps, params)
    jax.block_until_ready((recon, mu, logvar))

    # Pure-JAX f32 reference (bf16 matmul operands in the kernel -> loose tol).
    h_ref = jnp.tanh(x @ params["w1"] + params["b1"])
    mu_ref = h_ref @ params["wmu"] + params["bmu"]
    lv_ref = h_ref @ params["wlv"] + params["blv"]
    z_ref = mu_ref + jnp.exp(0.5 * lv_ref) * eps
    hd_ref = jnp.tanh(z_ref @ params["wd1"] + params["bd1"])
    recon_ref = hd_ref @ params["wd2"] + params["bd2"]

    assert recon.shape == (B, nin) and mu.shape == (B, nz) and logvar.shape == (B, nz)
    assert jnp.allclose(recon, recon_ref, atol=3e-2, rtol=3e-2)
    assert jnp.allclose(mu, mu_ref, atol=3e-2, rtol=3e-2)
    assert jnp.allclose(logvar, lv_ref, atol=3e-2, rtol=3e-2)

    print("KERNEL_OK")
</pallas_src>

<mosaic_0001>
module attributes {stable_mosaic.version = 11 : i64} {
  func.func @_vae_forward_kernel(%arg0: i32, %arg1: memref<8x128xbf16, #tpu.memory_space<vmem>>, %arg2: memref<8x128xf32, #tpu.memory_space<vmem>>, %arg3: memref<128x128xbf16, #tpu.memory_space<vmem>>, %arg4: memref<1x128xf32, #tpu.memory_space<vmem>>, %arg5: memref<128x256xbf16, #tpu.memory_space<vmem>>, %arg6: memref<1x256xf32, #tpu.memory_space<vmem>>, %arg7: memref<128x128xbf16, #tpu.memory_space<vmem>>, %arg8: memref<1x128xf32, #tpu.memory_space<vmem>>, %arg9: memref<128x128xbf16, #tpu.memory_space<vmem>>, %arg10: memref<1x128xf32, #tpu.memory_space<vmem>>, %arg11: memref<8x128xf32, #tpu.memory_space<vmem>>, %arg12: memref<8x256xf32, #tpu.memory_space<vmem>>) attributes {dimension_semantics = [#tpu.dimension_semantics<parallel>], iteration_bounds = array<i64: 1>, scalar_prefetch = 0 : i64, scratch_operands = 0 : i64, tpu.core_type = #tpu.core_type<tc>, window_params = [{transform_indices = @transform_0, window_bounds = array<i64: 8, 128>}, {transform_indices = @transform_1, window_bounds = array<i64: 8, 128>}, {pipeline_mode = #tpu.pipeline_mode<synchronous>, transform_indices = @transform_2, window_bounds = array<i64: 128, 128>}, {pipeline_mode = #tpu.pipeline_mode<synchronous>, transform_indices = @transform_3, window_bounds = array<i64: 1, 128>}, {pipeline_mode = #tpu.pipeline_mode<synchronous>, transform_indices = @transform_4, window_bounds = array<i64: 128, 256>}, {pipeline_mode = #tpu.pipeline_mode<synchronous>, transform_indices = @transform_5, window_bounds = array<i64: 1, 256>}, {pipeline_mode = #tpu.pipeline_mode<synchronous>, transform_indices = @transform_6, window_bounds = array<i64: 128, 128>}, {pipeline_mode = #tpu.pipeline_mode<synchronous>, transform_indices = @transform_7, window_bounds = array<i64: 1, 128>}, {pipeline_mode = #tpu.pipeline_mode<synchronous>, transform_indices = @transform_8, window_bounds = array<i64: 128, 128>}, {pipeline_mode = #tpu.pipeline_mode<synchronous>, transform_indices = @transform_9, window_bounds = array<i64: 1, 128>}, {transform_indices = @transform_10, window_bounds = array<i64: 8, 128>}, {transform_indices = @transform_11, window_bounds = array<i64: 8, 256>}]} {
    %c0 = arith.constant 0 : index
    %c0_0 = arith.constant 0 : index
    %0 = vector.load %arg1[%c0, %c0_0] : memref<8x128xbf16, #tpu.memory_space<vmem>>, vector<8x128xbf16>
    %c0_1 = arith.constant 0 : index
    %c0_2 = arith.constant 0 : index
    %1 = vector.load %arg3[%c0_1, %c0_2] : memref<128x128xbf16, #tpu.memory_space<vmem>>, vector<128x128xbf16>
    %cst = arith.constant dense<0.000000e+00> : vector<8x128xf32>
    %2 = tpu.matmul %0, %1, %cst {dimension_numbers = #tpu.dot_dimension_numbers<[1], [0], [0], [1], [0, 0, 1, 1], [], []>} : vector<8x128xbf16>, vector<128x128xbf16>, vector<8x128xf32> -> vector<8x128xf32>
    %c0_3 = arith.constant 0 : index
    %c0_4 = arith.constant 0 : index
    %3 = vector.load %arg4[%c0_3, %c0_4] : memref<1x128xf32, #tpu.memory_space<vmem>>, vector<1x128xf32>
    %4 = vector.broadcast %3 : vector<1x128xf32> to vector<8x128xf32>
    %5 = arith.addf %2, %4 : vector<8x128xf32>
    %6 = math.tanh %5 : vector<8x128xf32>
    %7 = arith.truncf %6 : vector<8x128xf32> to vector<8x128xbf16>
    %c0_5 = arith.constant 0 : index
    %c0_6 = arith.constant 0 : index
    %8 = vector.load %arg5[%c0_5, %c0_6] : memref<128x256xbf16, #tpu.memory_space<vmem>>, vector<128x256xbf16>
    %cst_7 = arith.constant dense<0.000000e+00> : vector<8x256xf32>
    %9 = tpu.matmul %7, %8, %cst_7 {dimension_numbers = #tpu.dot_dimension_numbers<[1], [0], [0], [1], [0, 0, 1, 1], [], []>} : vector<8x128xbf16>, vector<128x256xbf16>, vector<8x256xf32> -> vector<8x256xf32>
    %c0_8 = arith.constant 0 : index
    %c0_9 = arith.constant 0 : index
    %10 = vector.load %arg6[%c0_8, %c0_9] : memref<1x256xf32, #tpu.memory_space<vmem>>, vector<1x256xf32>
    %11 = vector.broadcast %10 : vector<1x256xf32> to vector<8x256xf32>
    %12 = arith.addf %9, %11 : vector<8x256xf32>
    %13 = vector.extract_strided_slice %12 {offsets = [0, 0], sizes = [8, 128], strides = [1, 1]} : vector<8x256xf32> to vector<8x128xf32>
    %14 = vector.extract_strided_slice %12 {offsets = [0, 128], sizes = [8, 128], strides = [1, 1]} : vector<8x256xf32> to vector<8x128xf32>
    %cst_10 = arith.constant 5.000000e-01 : f32
    %15 = vector.broadcast %cst_10 : f32 to vector<8x128xf32>
    %16 = arith.mulf %15, %14 : vector<8x128xf32>
    %17 = math.exp %16 : vector<8x128xf32>
    %c0_11 = arith.constant 0 : index
    %c0_12 = arith.constant 0 : index
    %18 = vector.load %arg2[%c0_11, %c0_12] : memref<8x128xf32, #tpu.memory_space<vmem>>, vector<8x128xf32>
    %19 = arith.mulf %17, %18 : vector<8x128xf32>
    %20 = arith.addf %13, %19 : vector<8x128xf32>
    %21 = arith.truncf %20 : vector<8x128xf32> to vector<8x128xbf16>
    %c0_13 = arith.constant 0 : index
    %c0_14 = arith.constant 0 : index
    %22 = vector.load %arg7[%c0_13, %c0_14] : memref<128x128xbf16, #tpu.memory_space<vmem>>, vector<128x128xbf16>
    %cst_15 = arith.constant dense<0.000000e+00> : vector<8x128xf32>
    %23 = tpu.matmul %21, %22, %cst_15 {dimension_numbers = #tpu.dot_dimension_numbers<[1], [0], [0], [1], [0, 0, 1, 1], [], []>} : vector<8x128xbf16>, vector<128x128xbf16>, vector<8x128xf32> -> vector<8x128xf32>
    %c0_16 = arith.constant 0 : index
    %c0_17 = arith.constant 0 : index
    %24 = vector.load %arg8[%c0_16, %c0_17] : memref<1x128xf32, #tpu.memory_space<vmem>>, vector<1x128xf32>
    %25 = vector.broadcast %24 : vector<1x128xf32> to vector<8x128xf32>
    %26 = arith.addf %23, %25 : vector<8x128xf32>
    %27 = math.tanh %26 : vector<8x128xf32>
    %28 = arith.truncf %27 : vector<8x128xf32> to vector<8x128xbf16>
    %c0_18 = arith.constant 0 : index
    %c0_19 = arith.constant 0 : index
    %29 = vector.load %arg9[%c0_18, %c0_19] : memref<128x128xbf16, #tpu.memory_space<vmem>>, vector<128x128xbf16>
    %cst_20 = arith.constant dense<0.000000e+00> : vector<8x128xf32>
    %30 = tpu.matmul %28, %29, %cst_20 {dimension_numbers = #tpu.dot_dimension_numbers<[1], [0], [0], [1], [0, 0, 1, 1], [], []>} : vector<8x128xbf16>, vector<128x128xbf16>, vector<8x128xf32> -> vector<8x128xf32>
    %c0_21 = arith.constant 0 : index
    %c0_22 = arith.constant 0 : index
    %31 = vector.load %arg10[%c0_21, %c0_22] : memref<1x128xf32, #tpu.memory_space<vmem>>, vector<1x128xf32>
    %32 = vector.broadcast %31 : vector<1x128xf32> to vector<8x128xf32>
    %33 = arith.addf %30, %32 : vector<8x128xf32>
    %c0_23 = arith.constant 0 : index
    %c0_24 = arith.constant 0 : index
    %34 = vector.load %arg11[%c0_23, %c0_24] : memref<8x128xf32, #tpu.memory_space<vmem>>, vector<8x128xf32>
    tpu.vector_store %arg11[%c0_23, %c0_24], %33 {strides = array<i32>} : memref<8x128xf32, #tpu.memory_space<vmem>>, vector<8x128xf32>,
    %c0_25 = arith.constant 0 : index
    %c0_26 = arith.constant 0 : index
    %35 = vector.load %arg12[%c0_25, %c0_26] : memref<8x256xf32, #tpu.memory_space<vmem>>, vector<8x256xf32>
    tpu.vector_store %arg12[%c0_25, %c0_26], %12 {strides = array<i32>} : memref<8x256xf32, #tpu.memory_space<vmem>>, vector<8x256xf32>,
    return
  }
  func.func @transform_0(%arg0: i32) -> (i32, i32) {
    %c0_i32 = arith.constant 0 : i32
    %c0_i32_0 = arith.constant 0 : i32
    return %arg0, %c0_i32 : i32, i32
  }
  func.func @transform_1(%arg0: i32) -> (i32, i32) {
    %c0_i32 = arith.constant 0 : i32
    %c0_i32_0 = arith.constant 0 : i32
    return %arg0, %c0_i32 : i32, i32
  }
  func.func @transform_2(%arg0: i32) -> (i32, i32) {
    %c0_i32 = arith.constant 0 : i32
    %c0_i32_0 = arith.constant 0 : i32
    %c0_i32_1 = arith.constant 0 : i32
    return %c0_i32, %c0_i32_0 : i32, i32
  }
  func.func @transform_3(%arg0: i32) -> (i32, i32) {
    %c0_i32 = arith.constant 0 : i32
    %c0_i32_0 = arith.constant 0 : i32
    %c0_i32_1 = arith.constant 0 : i32
    return %c0_i32, %c0_i32_0 : i32, i32
  }
  func.func @transform_4(%arg0: i32) -> (i32, i32) {
    %c0_i32 = arith.constant 0 : i32
    %c0_i32_0 = arith.constant 0 : i32
    %c0_i32_1 = arith.constant 0 : i32
    return %c0_i32, %c0_i32_0 : i32, i32
  }
  func.func @transform_5(%arg0: i32) -> (i32, i32) {
    %c0_i32 = arith.constant 0 : i32
    %c0_i32_0 = arith.constant 0 : i32
    %c0_i32_1 = arith.constant 0 : i32
    return %c0_i32, %c0_i32_0 : i32, i32
  }
  func.func @transform_6(%arg0: i32) -> (i32, i32) {
    %c0_i32 = arith.constant 0 : i32
    %c0_i32_0 = arith.constant 0 : i32
    %c0_i32_1 = arith.constant 0 : i32
    return %c0_i32, %c0_i32_0 : i32, i32
  }
  func.func @transform_7(%arg0: i32) -> (i32, i32) {
    %c0_i32 = arith.constant 0 : i32
    %c0_i32_0 = arith.constant 0 : i32
    %c0_i32_1 = arith.constant 0 : i32
    return %c0_i32, %c0_i32_0 : i32, i32
  }
  func.func @transform_8(%arg0: i32) -> (i32, i32) {
    %c0_i32 = arith.constant 0 : i32
    %c0_i32_0 = arith.constant 0 : i32
    %c0_i32_1 = arith.constant 0 : i32
    return %c0_i32, %c0_i32_0 : i32, i32
  }
  func.func @transform_9(%arg0: i32) -> (i32, i32) {
    %c0_i32 = arith.constant 0 : i32
    %c0_i32_0 = arith.constant 0 : i32
    %c0_i32_1 = arith.constant 0 : i32
    return %c0_i32, %c0_i32_0 : i32, i32
  }
  func.func @transform_10(%arg0: i32) -> (i32, i32) {
    %c0_i32 = arith.constant 0 : i32
    %c0_i32_0 = arith.constant 0 : i32
    return %arg0, %c0_i32 : i32, i32
  }
  func.func @transform_11(%arg0: i32) -> (i32, i32) {
    %c0_i32 = arith.constant 0 : i32
    %c0_i32_0 = arith.constant 0 : i32
    return %arg0, %c0_i32 : i32, i32
  }
}

</mosaic_0001>

<bundles_post_ra>
// kernel: vae_forward.1
= control target key start
LH: loop header
LB: loop body
LE: loop exit
PB: predicated region body
PF: predicated region fallthrough
CT: control target
= control target key end

     0   :  { %v766_v1 = vmov 0.0   ;;  %vm767_vm0 = vmmov 0   ;;  %s1016_s0 = inlined_call_operand.vmem [shape: bf16[8,128], index: 0, kind: input, shape index: {}]   ;;  %s1017_s1 = inlined_call_operand.vmem [shape: f32[8,128], index: 1, kind: input, shape index: {}]   ;;  %s1018_s2 = inlined_call_operand.vmem [shape: bf16[128,128], index: 2, kind: input, shape index: {}]   ;;  %s1019_s3 = inlined_call_operand.vmem [shape: f32[1,128], index: 3, kind: input, shape index: {}]   ;;  %s1020_s4 = inlined_call_operand.vmem [shape: bf16[128,256], index: 4, kind: input, shape index: {}]   ;;  %s1021_s5 = inlined_call_operand.vmem [shape: f32[1,256], index: 5, kind: input, shape index: {}]   ;;  %s1022_s6 = inlined_call_operand.vmem [shape: bf16[128,128], index: 6, kind: input, shape index: {}]   ;;  %s1023_s7 = inlined_call_operand.vmem [shape: f32[1,128], index: 7, kind: input, shape index: {}]   ;;  %s1024_s8 = inlined_call_operand.vmem [shape: bf16[128,128], index: 8, kind: input, shape index: {}]   ;;  %s1025_s9 = inlined_call_operand.vmem [shape: f32[1,128], index: 9, kind: input, shape index: {}]   ;;  %s1026_s10 = inlined_call_operand.hbm [shape: f32[8,128], index: 10, kind: output, shape index: {0}]   ;;  %s1027_s11 = inlined_call_operand.vmem [shape: f32[8,256], index: 11, kind: output, shape index: {1}]  }
   0x1   :  { %v688_v0 = vld [vmem:[%s1018_s2] sm:$0xff]   ;;  %624 = vmatprep.subr.bf16.mxu0 %v766_v1  ;;  %v689_v2 = vld [vmem:[%s1018_s2 + $0x8] sm:$0xff]   ;;  %640 = vmatprep.mubr.msk.bf16.mxu0 %vm767_vm0, %v766_v1  ;;  %v690_v3 = vld [vmem:[%s1018_s2 + $0x10] sm:$0xff]  }
   0x2   :  { %625 = vmatpush3.bf16.msra.mxu0 %v688_v0  ;;  %v696_v4 = vld [vmem:[%s1020_s4 + $0x4] ss:$8 sps:$4 sm:$0xff]   ;;  %v698_v5 = vld [vmem:[%s1020_s4] ss:$8 sps:$4 sm:$0xff]   ;;  %v691_v6 = vld [vmem:[%s1018_s2 + $0x18] sm:$0xff]  }
   0x3   :  { %626 = vmatprep.subr.bf16.mxu0 %v766_v1  ;;  %v699_v7 = vld [vmem:[%s1020_s4 + $0x14] ss:$8 sps:$4 sm:$0xff]   ;;  %261 = vmatprep.subr.bf16.mxu1 %v696_v4  ;;  %v701_v8 = vld [vmem:[%s1020_s4 + $0x10] ss:$8 sps:$4 sm:$0xff]   ;;  %v692_v9 = vld [vmem:[%s1018_s2 + $0x20] sm:$0xff]  }
   0x4   :  { %262 = vmatpush1.bf16.msra.mxu1 %v698_v5  ;;  %v702_v10 = vld [vmem:[%s1020_s4 + $0x24] ss:$8 sps:$4 sm:$0xff]   ;;  %v704_v11 = vld [vmem:[%s1020_s4 + $0x20] ss:$8 sps:$4 sm:$0xff]   ;;  %v705_v12 = vld [vmem:[%s1020_s4 + $0x34] ss:$8 sps:$4 sm:$0xff]  }
   0x5   :  { %263 = vmatprep.subr.bf16.mxu1 %v699_v7  ;;  %v693_v13 = vld [vmem:[%s1018_s2 + $0x28] sm:$0xff]   ;;  %v707_v14 = vld [vmem:[%s1020_s4 + $0x30] ss:$8 sps:$4 sm:$0xff]  }
   0x6   :  { %627 = vmatpush3.bf16.msra.mxu0 %v689_v2  ;;  %v694_v15 = vld [vmem:[%s1018_s2 + $0x30] sm:$0xff]   ;;  %v695_v16 = vld [vmem:[%s1018_s2 + $0x38] sm:$0xff]  }
   0x7   :  { %628 = vmatprep.subr.bf16.mxu0 %v766_v1 }
   0x8   :  { %264 = vmatpush1.bf16.msra.mxu1 %v701_v8 }
   0x9   :  { %265 = vmatprep.subr.bf16.mxu1 %v702_v10 }
   0xa   :  { %629 = vmatpush3.bf16.msra.mxu0 %v690_v3 }
   0xb   :  { %630 = vmatprep.subr.bf16.mxu0 %v766_v1 }
   0xc   :  { %266 = vmatpush1.bf16.msra.mxu1 %v704_v11 }
   0xd   :  { %267 = vmatprep.subr.bf16.mxu1 %v705_v12 }
   0xe   :  { %631 = vmatpush3.bf16.msra.mxu0 %v691_v6 }
   0xf   :  { %632 = vmatprep.subr.bf16.mxu0 %v766_v1 }
  0x10   :  { %268 = vmatpush1.bf16.msra.mxu1 %v707_v14 }
  0x12   :  { %633 = vmatpush3.bf16.msra.mxu0 %v692_v9 }
  0x13   :  { %634 = vmatprep.subr.bf16.mxu0 %v766_v1 }
  0x16   :  { %635 = vmatpush3.bf16.msra.mxu0 %v693_v13 }
  0x17   :  { %636 = vmatprep.subr.bf16.mxu0 %v766_v1 }
  0x1a   :  { %637 = vmatpush3.bf16.msra.mxu0 %v694_v15 }
  0x1b   :  { %638 = vmatprep.subr.bf16.mxu0 %v766_v1 }
  0x1c   :  { %17 = vsyncpa [#allocation3], 0  ;;  %v39_v17 = vld [vmem:[%s1016_s0] sm:$0xf]  ;;  %v708_v18 = vld [vmem:[%s1020_s4 + $0x44] ss:$8 sps:$4 sm:$0xff]   ;;  %v171_v47 = vlaneseq }
  0x1d   :  { %v710_v19 = vld [vmem:[%s1020_s4 + $0x40] ss:$8 sps:$4 sm:$0xff]   ;;  %269 = vmatprep.subr.bf16.mxu1 %v708_v18  ;;  %v711_v20 = vld [vmem:[%s1020_s4 + $0x54] ss:$8 sps:$4 sm:$0xff]   ;;  %v713_v21 = vld [vmem:[%s1020_s4 + $0x50] ss:$8 sps:$4 sm:$0xff]  }
  0x1e   :  { %639 = vmatpush3.bf16.msra.mxu0 %v695_v16  ;;  %270 = vmatpush1.bf16.msra.mxu1 %v710_v19  ;;  %v714_v22 = vld [vmem:[%s1020_s4 + $0x64] ss:$8 sps:$4 sm:$0xff]   ;;  %v716_v23 = vld [vmem:[%s1020_s4 + $0x60] ss:$8 sps:$4 sm:$0xff]   ;;  %v717_v24 = vld [vmem:[%s1020_s4 + $0x74] ss:$8 sps:$4 sm:$0xff]  }
  0x1f   :  { %644 = vmatprep.subr.bf16.mxu0 %v766_v1  ;;  %271 = vmatprep.subr.bf16.mxu1 %v711_v20  ;;  %v719_v25 = vld [vmem:[%s1020_s4 + $0x70] ss:$8 sps:$4 sm:$0xff]   ;;  %v768_v26 = vmov 0   ;;  %v720_v27 = vld [vmem:[%s1022_s6] sm:$0xff]   ;;  %v721_v28 = vld [vmem:[%s1022_s6 + $0x8] sm:$0xff]   ;;  %v172_v48 = vshrl.u32 %v171_v47, 7 }
  0x20   :  { %293 = vmatprep.mubr.bf16.mxu1 %v768_v26  ;;  %v554_v29 = vld [vmem:[%s1019_s3] ss:$0 sm:$0xff]  ;;  %v722_v37 = vld [vmem:[%s1022_s6 + $0x10] sm:$0xff]   ;;  %v723_v38 = vld [vmem:[%s1022_s6 + $0x18] sm:$0xff]   ;;  %s769_s23 = smov [#allocation2]  }
  0x21   :  { %641 = vmatmul.mubr.bf16.vlgmr.msra.gmra.mrb[0].mxu0 %v39_v17  ;;  %v724_v39 = vld [vmem:[%s1022_s6 + $0x20] sm:$0xff]   ;;  %v725_v40 = vld [vmem:[%s1022_s6 + $0x28] sm:$0xff]   ;;  %v726_v41 = vld [vmem:[%s1022_s6 + $0x30] sm:$0xff]   ;;  %v173_v49 = vsub.s32 0, %v172_v48  ;;  %v177_v51 = vsub.s32 1, %v172_v48 }
  0x22   :  { %660 = vmatprep.mubr.msk.bf16.mxu0 %vm767_vm0, %v766_v1  ;;  %272 = vmatpush1.bf16.msra.mxu1 %v713_v21  ;;  %v727_v42 = vld [vmem:[%s1022_s6 + $0x38] sm:$0xff]   ;;  %v728_v43 = vld [vmem:[%s1024_s8] sm:$0xff]   ;;  %v729_v44 = vld [vmem:[%s1024_s8 + $0x8] sm:$0xff]  }
  0x23   :  { %273 = vmatprep.subr.bf16.mxu1 %v714_v22  ;;  %645 = vmatpush3.bf16.msra.mxu0 %v720_v27  ;;  %v730_v45 = vld [vmem:[%s1024_s8 + $0x10] sm:$0xff]   ;;  %v731_v46 = vld [vmem:[%s1024_s8 + $0x18] sm:$0xff]   ;;  %v169_v50 = vld [vmem:[%s1021_s5] sm:$0x3] }
  0x24   :  { %646 = vmatprep.subr.bf16.mxu0 %v766_v1  ;;  %v174_v52 = vrot.slane %v169_v50, %v173_v49  ;;  %v178_v53 = vrot.slane %v169_v50, %v177_v51  ;;  %v305_v62 = vld [vmem:[%s1017_s1] sm:$0xff]  ;;  %v733_v5 = vld [vmem:[%s1024_s8 + $0x28] sm:$0xff]   ;;  %v734_v6 = vld [vmem:[%s1024_s8 + $0x30] sm:$0xff]  }
  0x25   :  { %v732_v4 = vld [vmem:[%s1024_s8 + $0x20] sm:$0xff]   ;;  %v735_v7 = vld [vmem:[%s1024_s8 + $0x38] sm:$0xff]   ;;  %s542_s8 = sshll.u32 %s769_s23, 4  ;;  %s543_s8 = int_to_ptr.vmem [resolvable:$true] %s542_s8 }
  0x26   :  { %274 = vmatpush1.bf16.msra.mxu1 %v716_v23  ;;  %v579_v8 = vld [vmem:[%s1023_s7] ss:$0 sm:$0xff]  ;;  %s742_s7 = scalar_lea.vmem %s543_s8, 128  ;;  %p747_p1 = scmp.lt.s32.totalorder %s543_s8, %s543_s8 }
  0x27   :  { %275 = vmatprep.subr.bf16.mxu1 %v717_v24  ;;  %647 = vmatpush3.bf16.msra.mxu0 %v721_v28  ;;  %p743_p0 = scmp.ne.s32.totalorder %s543_s8, %s742_s7  ;;  %p748_p2 = scmp.lt.s32.totalorder %s742_s7, %s742_s7 }
  0x28   :  { %648 = vmatprep.subr.bf16.mxu0 %v766_v1 }
  0x29   :  { %p749_p3 = por %p748_p2, %p747_p1 }
  0x2a   :  { %276 = vmatpush1.bf16.msra.mxu1 %v719_v25 }
  0x2b   :  { %664 = vmatprep.subr.bf16.mxu1 %v766_v1  ;;  %649 = vmatpush3.bf16.msra.mxu0 %v722_v37  ;;  %p750_p4 = pnand %p749_p3, %p743_p0 }
  0x2c   :  { %650 = vmatprep.subr.bf16.mxu0 %v766_v1 }
  0x2f   :  { %651 = vmatpush3.bf16.msra.mxu0 %v723_v38 }
  0x30   :  { %652 = vmatprep.subr.bf16.mxu0 %v766_v1 }
  0x33   :  { %653 = vmatpush3.bf16.msra.mxu0 %v724_v39 }
  0x34   :  { %654 = vmatprep.subr.bf16.mxu0 %v766_v1 }
  0x37   :  { %655 = vmatpush3.bf16.msra.mxu0 %v725_v40 }
  0x38   :  { %656 = vmatprep.subr.bf16.mxu0 %v766_v1 }
  0x3b   :  { %657 = vmatpush3.bf16.msra.mxu0 %v726_v41 }
  0x3c   :  { %658 = vmatprep.subr.bf16.mxu0 %v766_v1 }
  0x3f   :  { %659 = vmatpush3.bf16.msra.mxu0 %v727_v42 }
  0xf4   :  { %v145_v30 = vpop.f32.mrb[0].mxu0 }
  0xf5   :  { %v146_v31 = vadd.f32 %v554_v29, %v145_v30  ;;  %v642_v32 = vpop.f32.mrb[1].mxu0 }
  0xf6   :  { %v148_v33 = vpop.f32.mrb[2].mxu0 }
  0xf7   :  { %736 = vtanh.f32 %v146_v31  ;;  %v643_v34 = vpop.f32.mrb[3].mxu0 }
 0x101   :  { %v737_v35 = vpop.eup %736 }
 0x102   :  { %v152_v36 = vpack.c.bf16 %v737_v35, %v737_v35 }
 0x104   :  { %294 = vmatmul.mubr.bf16.vlgmr.msra.gmra.mrb[0].mxu1 %v152_v36 }
 0x105   :  { %680 = vmatprep.mubr.msk.bf16.mxu1 %vm767_vm0, %v766_v1  ;;  %665 = vmatpush3.bf16.msra.mxu1 %v728_v43 }
 0x106   :  { %666 = vmatprep.subr.bf16.mxu1 %v766_v1 }
 0x109   :  { %667 = vmatpush3.bf16.msra.mxu1 %v729_v44 }
 0x10a   :  { %668 = vmatprep.subr.bf16.mxu1 %v766_v1 }
 0x10d   :  { %669 = vmatpush3.bf16.msra.mxu1 %v730_v45 }
 0x10e   :  { %670 = vmatprep.subr.bf16.mxu1 %v766_v1 }
 0x111   :  { %671 = vmatpush3.bf16.msra.mxu1 %v731_v46 }
 0x112   :  { %672 = vmatprep.subr.bf16.mxu1 %v766_v1 }
 0x115   :  { %673 = vmatpush3.bf16.msra.mxu1 %v732_v4 }
 0x116   :  { %674 = vmatprep.subr.bf16.mxu1 %v766_v1 }
 0x119   :  { %675 = vmatpush3.bf16.msra.mxu1 %v733_v5 }
 0x11a   :  { %676 = vmatprep.subr.bf16.mxu1 %v766_v1 }
 0x11d   :  { %677 = vmatpush3.bf16.msra.mxu1 %v734_v6 }
 0x11e   :  { %678 = vmatprep.subr.bf16.mxu1 %v766_v1  ;;  %v588_v1 = vld [vmem:[%s1025_s9] ss:$0 sm:$0xff] }
 0x121   :  { %679 = vmatpush3.bf16.msra.mxu1 %v735_v7 }
 0x1d7   :  { %v295_v54 = vpop.f32.mrb[0].mxu1 }
 0x1d8   :  { %v296_v55 = vadd.f32 %v295_v54, %v174_v52  ;;  %v297_v56 = vpop.f32.mrb[1].mxu1 }
 0x1d9   :  { %v298_v57 = vadd.f32 %v297_v56, %v178_v53  ;;  %v299_v58 = vpop.f32.mrb[2].mxu1 }
 0x1da   :  { %534 = vst [vmem:[%s1027_s11] sm:$0xff] %v296_v55  ;;  %v300_v59 = vpop.f32.mrb[3].mxu1 }
 0x1db   :  { %v302_v60 = vmul.f32 0.5, %v298_v57  ;;  %535 = vst [vmem:[%s1027_s11 + $0x8] sm:$0xff] %v298_v57 }
 0x1dd   :  { %v303_v61 = vmul.f32 1.442695, %v302_v60 }
 0x1df   :  { %738 = vpow2.f32 %v303_v61 }
 0x1e9   :  { %v739_v63 = vpop.eup %738 }
 0x1ea   :  { %v306_v0 = vmul.f32 %v739_v63, %v305_v62 }
 0x1ec   :  { %v307_v2 = vadd.f32 %v306_v0, %v296_v55 }
 0x1ee   :  { %v308_v3 = vpack.c.bf16 %v307_v2, %v307_v2 }
 0x1f0   :  { %661 = vmatmul.mubr.bf16.vlgmr.msra.gmra.mrb[4].mxu0 %v308_v3 }
 0x2c3   :  { %v414_v9 = vpop.f32.mrb[4].mxu0 }
 0x2c4   :  { %v415_v10 = vadd.f32 %v579_v8, %v414_v9  ;;  %v662_v11 = vpop.f32.mrb[5].mxu0 }
 0x2c5   :  { %v417_v12 = vpop.f32.mrb[6].mxu0 }
 0x2c6   :  { %740 = vtanh.f32 %v415_v10  ;;  %v663_v13 = vpop.f32.mrb[7].mxu0 }
 0x2d0   :  { %v741_v14 = vpop.eup %740 }
 0x2d1   :  { %v421_v15 = vpack.c.bf16 %v741_v14, %v741_v14 }
 0x2d3   :  { %681 = vmatmul.mubr.bf16.vlgmr.msra.gmra.mrb[4].mxu1 %v421_v15 }
 0x3a6   :  { %v527_v16 = vpop.f32.mrb[4].mxu1 }
 0x3a7   :  { %v528_v17 = vadd.f32 %v588_v1, %v527_v16  ;;  %v682_v18 = vpop.f32.mrb[5].mxu1 }
 0x3a8   :  { %v530_v19 = vpop.f32.mrb[6].mxu1 }
 0x3a9   :  { %533 = vst [vmem:[#allocation2] sm:$0xff] %v528_v17  ;;  %v683_v20 = vpop.f32.mrb[7].mxu1 }
 0x3aa   :  { %753 = shalt.err (!%p750_p4)
}
 0x3ab   :  { %s754_s9 = scalar_lea.hbm %s1026_s10, 128 }
 0x3ac   :  { %p755_p5 = scmp.ne.s32.totalorder %s1026_s10, %s754_s9  ;;  %p758_p6 = scmp.lt.u32.totalorder %s754_s9, %s1026_s10 }
 0x3ae   :  { %p760_p7 = pnand %p758_p6, %p755_p5 }
 0x3b0   :  { %763 = shalt.err (!%p760_p7)
}
 0x3b1   :  { %545 = dma.vmem_to_hbm [thread:$0]  %s543_s8, 128, %s1026_s10, [#allocation3]  }
 0x3b2   :  { %764 = dma.done.wait [#allocation3], 128  }
 0x3b3   :  { %765 = vsyncadd [#allocation3], 4294967168 }
 0x3b4   :  { %553 = vsyncpa [#allocation3], 1 }

</bundles_post_ra>
